<compile_context>
chip_gen: v6e
topology: v6e:2x2x1
jax: 0.10.0
libtpu: 0.0.40
codegen_flags: <defaults>
</compile_context>

<pallas_src>
import numpy as np
import jax
import jax.numpy as jnp
from jax.experimental import pallas as pl
from jax.experimental.pallas import tpu as pltpu


# ----------------------------- host-side helpers ------------------------------
def _haar_matrix(L):
    """Orthonormal 1-D Haar (db1) analysis matrix A: A^T x = [lowpass | highpass]."""
    m = np.zeros((L, L), dtype=np.float32)
    inv = np.float32(1.0 / np.sqrt(2.0))
    for k in range(L // 2):
        m[2 * k, k] = inv
        m[2 * k + 1, k] = inv
        m[2 * k, L // 2 + k] = inv
        m[2 * k + 1, L // 2 + k] = -inv
    return m


def _block_diag(block, reps):
    h, w = block.shape
    out = np.zeros((reps * h, reps * w), dtype=np.float32)
    for b in range(reps):
        out[b * h:(b + 1) * h, b * w:(b + 1) * w] = block
    return out


def _divisors(n):
    return [d for d in range(1, n + 1) if n % d == 0]


def _choose_stacking(nc, h, w):
    """Pick (Br, Bc): planes row-stacked x column-stacked per slab.
    Priorities (perf review): lane-dense slabs (Bc*W % 128 == 0, <= 512 lanes so
    the O((Bc*W)^2) constants stay small), >= 2 (even) grid steps for the two
    v7x TensorCores, then fill the MXU M dimension (Br*H as large as possible,
    <= 256) for small images."""
    best, best_key = (1, 1), None
    for bc in _divisors(nc):
        lanes = bc * w
        if bc > 1 and lanes > 512:
            continue
        for br in _divisors(nc // bc):
            rows = br * h
            if br > 1 and rows > 256:
                continue
            g = nc // (bc * br)
            key = (lanes % 128 == 0,      # lane-dense stores / MXU N-dim
                   g >= 2,                # both TensorCores get work
                   g % 2 == 0,            # even megacore split
                   min(rows, 256),        # MXU M-dim fill (row-stacking)
                   min(lanes, 512),       # wider slabs -> fewer grid steps
                   -(br * bc))            # tie-break: smaller slabs
            if best_key is None or key > best_key:
                best, best_key = (br, bc), key
    return best


def _const_spec(shape, single_buffer):
    """BlockSpec for a grid-invariant operand.  Single-buffer it (Buffered(1)):
    it is DMA'd once, so a second VMEM buffer is pure waste."""
    if single_buffer:
        try:
            return pl.BlockSpec(shape, lambda g: (0, 0), pipeline_mode=pl.Buffered(1))
        except Exception:  # this JAX build has no pipeline_mode / Buffered
            pass
    return pl.BlockSpec(shape, lambda g: (0, 0))


def _vmem_limit_bytes(stream_blocks, const_blocks):
    """Explicit scoped-VMEM budget (v5e default is only 16 MiB)."""
    stream = sum(int(np.prod(s)) for s in stream_blocks) * 4 * 2   # double-buffered
    const = sum(int(np.prod(s)) for s in const_blocks) * 4 * 2     # conservative
    need = int(1.25 * (stream + const)) + (2 << 20)
    return int(min(max(need, 32 << 20), 64 << 20))


# --------------------------------- forward ------------------------------------
def _wnr_forward_impl(images, keep_percentage, single_buffer_consts):
    N, C_, H, W = images.shape
    assert H % 4 == 0 and W % 4 == 0, "2-level db1 DWT needs H, W divisible by 4"
    NC = N * C_
    H2, W2 = H // 2, W // 2
    H4, W4 = H // 4, W // 4
    keep = keep_percentage / 100.0

    Br, Bc = _choose_stacking(NC, H, W)
    G = NC // (Br * Bc)
    R, CW = Br * H, Bc * W            # level-1 slab rows / lanes
    R2, C2 = Br * H2, Bc * W2         # level-2 slab rows / lanes

    # ------------- tiny host-side constants (built once, f32) -----------------
    AH = _haar_matrix(H)
    AW = _haar_matrix(W)
    BH = _haar_matrix(H2)
    BW = _haar_matrix(W2)

    DAHT = jnp.asarray(_block_diag(AH.T, Br))        # (R, R)   level-1 row analysis
    DAW = jnp.asarray(_block_diag(AW, Bc))           # (CW, CW) level-1 col analysis
    DBHT = jnp.asarray(_block_diag(BH.T, Br))        # (R2, R2) level-2 row analysis
    DBWs = jnp.asarray(_block_diag(                  # (CW, C2) level-2 col analysis,
        np.vstack([BW, np.zeros((W - W2, W2), np.float32)]), Bc))  # LL-col selection folded in
    DBH = jnp.asarray(_block_diag(BH, Br))           # (R2, R2) level-2 row synthesis
    DBWTe = jnp.asarray(_block_diag(                 # (C2, CW) level-2 col synthesis,
        np.hstack([BW.T, np.zeros((W2, W - W2), np.float32)]), Bc))  # re-embedding folded in
    DAH = jnp.asarray(_block_diag(AH, Br))           # (R, R)   level-1 row synthesis
    DAWT = jnp.asarray(_block_diag(AW.T, Bc))        # (CW, CW) level-1 col synthesis

    # tiny 0/1 mask vectors (replace the old full-size mask slabs)
    RM1 = jnp.asarray(((np.arange(R) % H) >= H2).astype(np.float32)[:, None])    # (R, 1)
    CM1 = jnp.asarray(((np.arange(CW) % W) >= W2).astype(np.float32)[None, :])   # (1, CW)
    RM2 = jnp.asarray(((np.arange(R2) % H2) >= H4).astype(np.float32)[:, None])  # (R2, 1)
    CM2 = jnp.asarray(((np.arange(C2) % W2) >= W4).astype(np.float32)[None, :])  # (1, C2)

    # ------------- pack planes into (Br*H, Bc*W) slabs -------------------------
    x = images.reshape(NC, H, W).astype(jnp.float32)
    x_slab = x.reshape(G, Br, Bc, H, W).transpose(0, 1, 3, 2, 4).reshape(G, R, CW)

    cspec = lambda shape: _const_spec(shape, single_buffer_consts)

    # ------------- kernel 1: 2-level Haar DWT + |detail| emission --------------
    def dwt_kernel(x_ref, daht_ref, daw_ref, dbht_ref, dbws_ref,
                   rm1_ref, cm1_ref, rm2_ref, cm2_ref,
                   y1_ref, y2_ref, a1_ref, a2_ref):
        xs = x_ref[0]                                                         # (R, CW)
        y1 = jnp.dot(jnp.dot(daht_ref[...], xs, preferred_element_type=jnp.float32),
                     daw_ref[...], preferred_element_type=jnp.float32)        # (R, CW)
        # gather each plane's LL1 rows (sublane-aligned static slices)
        if Br == 1:
            y1_lo = y1[:H2, :]
        else:
            y1_lo = jnp.concatenate(
                [y1[p * H:p * H + H2, :] for p in range(Br)], axis=0)         # (R2, CW)
        # right-multiply first: the folded LL-column selection shrinks the lane dim
        y2 = jnp.dot(dbht_ref[...],
                     jnp.dot(y1_lo, dbws_ref[...], preferred_element_type=jnp.float32),
                     preferred_element_type=jnp.float32)                      # (R2, C2)
        y1_ref[0] = y1
        y2_ref[0] = y2
        # detail masks from tiny vectors (broadcast OR on the VPU)
        det1 = jnp.logical_or(rm1_ref[...] > 0.5, cm1_ref[...] > 0.5)         # (R, CW)
        det2 = jnp.logical_or(rm2_ref[...] > 0.5, cm2_ref[...] > 0.5)         # (R2, C2)
        big = jnp.float32(jnp.inf)   # approximation slots sort after every detail
        a1_ref[0] = jnp.where(det1, jnp.abs(y1), big)
        a2_ref[0] = jnp.where(det2, jnp.abs(y2), big)

    fwd_stream_blocks = [(1, R, CW)] * 3 + [(1, R2, C2)] * 2
    fwd_const_blocks = [(R, R), (CW, CW), (R2, R2), (CW, C2),
                        (R, 1), (1, CW), (R2, 1), (1, C2)]

    y1s, y2s, a1s, a2s = pl.pallas_call(
        dwt_kernel,
        grid=(G,),
        in_specs=[
            pl.BlockSpec((1, R, CW), lambda g: (g, 0, 0)),
            cspec((R, R)), cspec((CW, CW)), cspec((R2, R2)), cspec((CW, C2)),
            cspec((R, 1)), cspec((1, CW)), cspec((R2, 1)), cspec((1, C2)),
        ],
        out_specs=[
            pl.BlockSpec((1, R, CW), lambda g: (g, 0, 0)),
            pl.BlockSpec((1, R2, C2), lambda g: (g, 0, 0)),
            pl.BlockSpec((1, R, CW), lambda g: (g, 0, 0)),
            pl.BlockSpec((1, R2, C2), lambda g: (g, 0, 0)),
        ],
        out_shape=[
            jax.ShapeDtypeStruct((G, R, CW), jnp.float32),
            jax.ShapeDtypeStruct((G, R2, C2), jnp.float32),
            jax.ShapeDtypeStruct((G, R, CW), jnp.float32),
            jax.ShapeDtypeStruct((G, R2, C2), jnp.float32),
        ],
        compiler_params=pltpu.CompilerParams(
            dimension_semantics=("parallel",),
            vmem_limit_bytes=_vmem_limit_bytes(fwd_stream_blocks, fwd_const_blocks)),
    )(x_slab, DAHT, DAW, DBHT, DBWs, RM1, CM1, RM2, CM2)

    # ------------- glue: per-(n,c) k-th order statistic of |detail| ------------
    # TODO(synk): jnp.sort has no Mosaic lowering; a Pallas bit-bisection
    # quantile kernel would let DWT -> threshold -> IDWT fuse into one call.
    a1 = a1s.reshape(G, Br, H, Bc, W).transpose(0, 1, 3, 2, 4).reshape(NC, H * W)
    a2 = a2s.reshape(G, Br, H2, Bc, W2).transpose(0, 1, 3, 2, 4).reshape(NC, H2 * W2)
    all_abs = jnp.concatenate([a1, a2], axis=1)        # approx slots are +inf pads
    s_true = 3 * H2 * W2 + 3 * H4 * W4                 # true number of detail coeffs
    k = min(int(np.floor((1.0 - keep) * s_true)), s_true - 1)
    thresh = jnp.sort(all_abs, axis=1)[:, k]           # (NC,) float32

    thr_gbc = thresh.reshape(G, Br, Bc)
    thr1 = jnp.repeat(thr_gbc, W, axis=2)              # (G, Br, CW)
    thr2 = jnp.repeat(thr_gbc, W2, axis=2)             # (G, Br, C2)

    # ------------- kernel 2: hard-threshold + fused inverse 2-level DWT --------
    def iwt_kernel(t1_ref, t2_ref, y1_ref, y2_ref,
                   cm1_ref, rm2_ref, cm2_ref,
                   dbh_ref, dbwte_ref, dah_ref, dawt_ref, o_ref):
        y1 = y1_ref[0]                       # (R, CW)
        y2 = y2_ref[0]                       # (R2, C2)
        t1 = t1_ref[0]                       # (Br, CW) per plane-row-block thresholds
        t2 = t2_ref[0]                       # (Br, C2)
        kcol1 = cm1_ref[...] > 0.5           # (1, CW) detail-column mask, level 1
        det2 = jnp.logical_or(rm2_ref[...] > 0.5, cm2_ref[...] > 0.5)   # (R2, C2)

        # level 2: zero small details, keep the LL2 quadrant untouched
        y2k_parts = []
        for p in range(Br):
            yb = y2[p * H2:(p + 1) * H2, :]
            db = det2[p * H2:(p + 1) * H2, :]
            tb = t2[p:p + 1, :]
            y2k_parts.append(jnp.where(jnp.logical_and(db, jnp.abs(yb) <= tb), 0.0, yb))
        y2k = y2k_parts[0] if Br == 1 else jnp.concatenate(y2k_parts, axis=0)

        # level-2 inverse; LL-column re-embedding folded into the right constant
        ll1 = jnp.dot(dbh_ref[...],
                      jnp.dot(y2k, dbwte_ref[...], preferred_element_type=jnp.float32),
                      preferred_element_type=jnp.float32)                 # (R2, CW)

        # level 1: keep only large details; splice the reconstructed LL1 rows back
        # in per plane-row-block (no zero slab / full-size concat temporaries).
        parts = []
        for p in range(Br):
            r0 = p * H
            top_y = y1[r0:r0 + H2, :]
            bot_y = y1[r0 + H2:r0 + H, :]
            tb = t1[p:p + 1, :]
            top = jnp.where(jnp.logical_and(kcol1, jnp.abs(top_y) > tb), top_y, 0.0) \
                + ll1[p * H2:(p + 1) * H2, :]
            bot = jnp.where(jnp.abs(bot_y) > tb, bot_y, 0.0)
            parts.append(top)
            parts.append(bot)
        y1full = jnp.concatenate(parts, axis=0)                           # (R, CW)

        o_ref[0] = jnp.dot(dah_ref[...],
                           jnp.dot(y1full, dawt_ref[...],
                                   preferred_element_type=jnp.float32),
                           preferred_element_type=jnp.float32)

    inv_stream_blocks = [(1, Br, CW), (1, Br, C2), (1, R, CW), (1, R2, C2), (1, R, CW)]
    inv_const_blocks = [(1, CW), (R2, 1), (1, C2), (R2, R2), (C2, CW), (R, R), (CW, CW)]

    out_slab = pl.pallas_call(
        iwt_kernel,
        grid=(G,),
        in_specs=[
            pl.BlockSpec((1, Br, CW), lambda g: (g, 0, 0)),     # thr level-1
            pl.BlockSpec((1, Br, C2), lambda g: (g, 0, 0)),     # thr level-2
            pl.BlockSpec((1, R, CW), lambda g: (g, 0, 0)),      # y1 slab
            pl.BlockSpec((1, R2, C2), lambda g: (g, 0, 0)),     # y2 slab
            cspec((1, CW)), cspec((R2, 1)), cspec((1, C2)),     # tiny masks
            cspec((R2, R2)), cspec((C2, CW)),                   # level-2 synthesis
            cspec((R, R)), cspec((CW, CW)),                     # level-1 synthesis
        ],
        out_specs=pl.BlockSpec((1, R, CW), lambda g: (g, 0, 0)),
        out_shape=jax.ShapeDtypeStruct((G, R, CW), jnp.float32),
        compiler_params=pltpu.CompilerParams(
            dimension_semantics=("parallel",),
            vmem_limit_bytes=_vmem_limit_bytes(inv_stream_blocks, inv_const_blocks)),
    )(thr1, thr2, y1s, y2s, CM1, RM2, CM2, DBH, DBWTe, DAH, DAWT)

    out = (out_slab.reshape(G, Br, H, Bc, W).transpose(0, 1, 3, 2, 4)
           .reshape(N, C_, H, W))
    return out.astype(images.dtype)


def wnr_forward(images, keep_percentage=16):
    """WNR forward: 2-level db1 DWT -> per-(n,c) hard threshold at the
    keep_percentage quantile of |detail coeffs| -> inverse DWT."""
    try:
        return _wnr_forward_impl(images, keep_percentage, single_buffer_consts=True)
    except Exception:
        # Fallback if this JAX build rejects single-buffered constant operands.
        return _wnr_forward_impl(images, keep_percentage, single_buffer_consts=False)


# ------------------------- pure NumPy reference -------------------------------
def _reference_wnr(x, keep_percentage=16):
    inv = 1.0 / np.sqrt(2.0)
    N, C, H, W = x.shape

    def dwt2(a):
        lo = (a[..., 0::2] + a[..., 1::2]) * inv
        hi = (a[..., 0::2] - a[..., 1::2]) * inv
        LL = (lo[..., 0::2, :] + lo[..., 1::2, :]) * inv
        LH = (lo[..., 0::2, :] - lo[..., 1::2, :]) * inv
        HL = (hi[..., 0::2, :] + hi[..., 1::2, :]) * inv
        HH = (hi[..., 0::2, :] - hi[..., 1::2, :]) * inv
        return LL, np.stack([LH, HL, HH], axis=2)

    def idwt2(LL, bands):
        LH, HL, HH = bands[:, :, 0], bands[:, :, 1], bands[:, :, 2]
        h2, w2 = LL.shape[-2], LL.shape[-1]
        lo = np.zeros(LL.shape[:-2] + (2 * h2, w2), dtype=LL.dtype)
        hi = np.zeros_like(lo)
        lo[..., 0::2, :] = (LL + LH) * inv
        lo[..., 1::2, :] = (LL - LH) * inv
        hi[..., 0::2, :] = (HL + HH) * inv
        hi[..., 1::2, :] = (HL - HH) * inv
        out = np.zeros(lo.shape[:-1] + (2 * w2,), dtype=LL.dtype)
        out[..., 0::2] = (lo + hi) * inv
        out[..., 1::2] = (lo - hi) * inv
        return out

    keep = keep_percentage / 100.0
    LL1, D1 = dwt2(x)
    LL2, D2 = dwt2(LL1)
    temp = np.concatenate([D1.reshape(N, C, -1), D2.reshape(N, C, -1)], axis=2)
    Csort = np.sort(np.abs(temp), axis=2)
    s = Csort.shape[2]
    thr = Csort[:, :, int(np.floor((1.0 - keep) * s))][:, :, None, None, None]
    D1 = D1 * (np.abs(D1) > thr)
    D2 = D2 * (np.abs(D2) > thr)
    LL1r = idwt2(LL2, D2)
    return idwt2(LL1r, D1)


if __name__ == "__main__":
    # main test (column-stacked planes, Bc*W = 128 lanes)
    key = jax.random.PRNGKey(0)
    N, C, H, W = 2, 4, 16, 16
    images = jax.random.normal(key, (N, C, H, W), dtype=jnp.float32)
    out = jax.block_until_ready(wnr_forward(images, keep_percentage=16))
    ref = _reference_wnr(np.asarray(images, dtype=np.float64), keep_percentage=16)
    np.testing.assert_allclose(np.asarray(out, dtype=np.float64), ref,
                               rtol=1e-4, atol=1e-4)

    # second shape exercises the row-stacked (Br > 1) slab path
    images2 = jax.random.normal(jax.random.PRNGKey(1), (4, 8, 16, 16), dtype=jnp.float32)
    out2 = jax.block_until_ready(wnr_forward(images2, keep_percentage=16))
    ref2 = _reference_wnr(np.asarray(images2, dtype=np.float64), keep_percentage=16)
    np.testing.assert_allclose(np.asarray(out2, dtype=np.float64), ref2,
                               rtol=1e-4, atol=1e-4)

    print("KERNEL_OK")
</pallas_src>

<mosaic_0001>
module attributes {stable_mosaic.version = 11 : i64} {
  func.func @dwt_kernel(%arg0: i32, %arg1: memref<1x16x128xf32, #tpu.memory_space<vmem>>, %arg2: memref<16x16xf32, #tpu.memory_space<vmem>>, %arg3: memref<128x128xf32, #tpu.memory_space<vmem>>, %arg4: memref<8x8xf32, #tpu.memory_space<vmem>>, %arg5: memref<128x64xf32, #tpu.memory_space<vmem>>, %arg6: memref<16x1xf32, #tpu.memory_space<vmem>>, %arg7: memref<1x128xf32, #tpu.memory_space<vmem>>, %arg8: memref<8x1xf32, #tpu.memory_space<vmem>>, %arg9: memref<1x64xf32, #tpu.memory_space<vmem>>, %arg10: memref<1x16x128xf32, #tpu.memory_space<vmem>>, %arg11: memref<1x8x64xf32, #tpu.memory_space<vmem>>, %arg12: memref<1x16x128xf32, #tpu.memory_space<vmem>>, %arg13: memref<1x8x64xf32, #tpu.memory_space<vmem>>) attributes {dimension_semantics = [#tpu.dimension_semantics<parallel>], iteration_bounds = array<i64: 1>, scalar_prefetch = 0 : i64, scratch_operands = 0 : i64, tpu.core_type = #tpu.core_type<tc>, window_params = [{transform_indices = @transform_0, window_bounds = array<i64: 1, 16, 128>}, {pipeline_mode = #tpu.pipeline_mode<synchronous>, transform_indices = @transform_1, window_bounds = array<i64: 16, 16>}, {pipeline_mode = #tpu.pipeline_mode<synchronous>, transform_indices = @transform_2, window_bounds = array<i64: 128, 128>}, {pipeline_mode = #tpu.pipeline_mode<synchronous>, transform_indices = @transform_3, window_bounds = array<i64: 8, 8>}, {pipeline_mode = #tpu.pipeline_mode<synchronous>, transform_indices = @transform_4, window_bounds = array<i64: 128, 64>}, {pipeline_mode = #tpu.pipeline_mode<synchronous>, transform_indices = @transform_5, window_bounds = array<i64: 16, 1>}, {pipeline_mode = #tpu.pipeline_mode<synchronous>, transform_indices = @transform_6, window_bounds = array<i64: 1, 128>}, {pipeline_mode = #tpu.pipeline_mode<synchronous>, transform_indices = @transform_7, window_bounds = array<i64: 8, 1>}, {pipeline_mode = #tpu.pipeline_mode<synchronous>, transform_indices = @transform_8, window_bounds = array<i64: 1, 64>}, {transform_indices = @transform_9, window_bounds = array<i64: 1, 16, 128>}, {transform_indices = @transform_10, window_bounds = array<i64: 1, 8, 64>}, {transform_indices = @transform_11, window_bounds = array<i64: 1, 16, 128>}, {transform_indices = @transform_12, window_bounds = array<i64: 1, 8, 64>}]} {
    %c0 = arith.constant 0 : index
    %c0_0 = arith.constant 0 : index
    %c0_1 = arith.constant 0 : index
    %0 = vector.load %arg1[%c0, %c0_0, %c0_1] : memref<1x16x128xf32, #tpu.memory_space<vmem>>, vector<1x16x128xf32>
    %1 = vector.shape_cast %0 : vector<1x16x128xf32> to vector<16x128xf32>
    %c0_2 = arith.constant 0 : index
    %c0_3 = arith.constant 0 : index
    %2 = vector.load %arg2[%c0_2, %c0_3] : memref<16x16xf32, #tpu.memory_space<vmem>>, vector<16x16xf32>
    %cst = arith.constant dense<0.000000e+00> : vector<16x128xf32>
    %3 = tpu.matmul %2, %1, %cst {dimension_numbers = #tpu.dot_dimension_numbers<[1], [0], [0], [1], [0, 0, 1, 1], [], []>} : vector<16x16xf32>, vector<16x128xf32>, vector<16x128xf32> -> vector<16x128xf32>
    %c0_4 = arith.constant 0 : index
    %c0_5 = arith.constant 0 : index
    %4 = vector.load %arg3[%c0_4, %c0_5] : memref<128x128xf32, #tpu.memory_space<vmem>>, vector<128x128xf32>
    %cst_6 = arith.constant dense<0.000000e+00> : vector<16x128xf32>
    %5 = tpu.matmul %3, %4, %cst_6 {dimension_numbers = #tpu.dot_dimension_numbers<[1], [0], [0], [1], [0, 0, 1, 1], [], []>} : vector<16x128xf32>, vector<128x128xf32>, vector<16x128xf32> -> vector<16x128xf32>
    %6 = vector.extract_strided_slice %5 {offsets = [0, 0], sizes = [8, 128], strides = [1, 1]} : vector<16x128xf32> to vector<8x128xf32>
    %c0_7 = arith.constant 0 : index
    %c0_8 = arith.constant 0 : index
    %7 = vector.load %arg4[%c0_7, %c0_8] : memref<8x8xf32, #tpu.memory_space<vmem>>, vector<8x8xf32>
    %c0_9 = arith.constant 0 : index
    %c0_10 = arith.constant 0 : index
    %8 = vector.load %arg5[%c0_9, %c0_10] : memref<128x64xf32, #tpu.memory_space<vmem>>, vector<128x64xf32>
    %cst_11 = arith.constant dense<0.000000e+00> : vector<8x64xf32>
    %9 = tpu.matmul %6, %8, %cst_11 {dimension_numbers = #tpu.dot_dimension_numbers<[1], [0], [0], [1], [0, 0, 1, 1], [], []>} : vector<8x128xf32>, vector<128x64xf32>, vector<8x64xf32> -> vector<8x64xf32>
    %cst_12 = arith.constant dense<0.000000e+00> : vector<8x64xf32>
    %10 = tpu.matmul %7, %9, %cst_12 {dimension_numbers = #tpu.dot_dimension_numbers<[1], [0], [0], [1], [0, 0, 1, 1], [], []>} : vector<8x8xf32>, vector<8x64xf32>, vector<8x64xf32> -> vector<8x64xf32>
    %c0_13 = arith.constant 0 : index
    %c0_14 = arith.constant 0 : index
    %c0_15 = arith.constant 0 : index
    %11 = vector.load %arg10[%c0_13, %c0_14, %c0_15] : memref<1x16x128xf32, #tpu.memory_space<vmem>>, vector<1x16x128xf32>
    %12 = vector.shape_cast %11 : vector<1x16x128xf32> to vector<16x128xf32>
    %13 = vector.shape_cast %5 : vector<16x128xf32> to vector<1x16x128xf32>
    tpu.vector_store %arg10[%c0_13, %c0_14, %c0_15], %13 {strides = array<i32>} : memref<1x16x128xf32, #tpu.memory_space<vmem>>, vector<1x16x128xf32>,
    %c0_16 = arith.constant 0 : index
    %c0_17 = arith.constant 0 : index
    %c0_18 = arith.constant 0 : index
    %14 = vector.load %arg11[%c0_16, %c0_17, %c0_18] : memref<1x8x64xf32, #tpu.memory_space<vmem>>, vector<1x8x64xf32>
    %15 = vector.shape_cast %14 : vector<1x8x64xf32> to vector<8x64xf32>
    %16 = vector.shape_cast %10 : vector<8x64xf32> to vector<1x8x64xf32>
    tpu.vector_store %arg11[%c0_16, %c0_17, %c0_18], %16 {strides = array<i32>} : memref<1x8x64xf32, #tpu.memory_space<vmem>>, vector<1x8x64xf32>,
    %c0_19 = arith.constant 0 : index
    %c0_20 = arith.constant 0 : index
    %17 = vector.load %arg6[%c0_19, %c0_20] : memref<16x1xf32, #tpu.memory_space<vmem>>, vector<16x1xf32>
    %cst_21 = arith.constant 5.000000e-01 : f32
    %18 = vector.broadcast %cst_21 : f32 to vector<16x1xf32>
    %19 = arith.cmpf ogt, %17, %18 : vector<16x1xf32>
    %c0_22 = arith.constant 0 : index
    %c0_23 = arith.constant 0 : index
    %20 = vector.load %arg7[%c0_22, %c0_23] : memref<1x128xf32, #tpu.memory_space<vmem>>, vector<1x128xf32>
    %cst_24 = arith.constant 5.000000e-01 : f32
    %21 = vector.broadcast %cst_24 : f32 to vector<1x128xf32>
    %22 = arith.cmpf ogt, %20, %21 : vector<1x128xf32>
    %23 = vector.broadcast %19 : vector<16x1xi1> to vector<16x128xi1>
    %24 = vector.broadcast %22 : vector<1x128xi1> to vector<16x128xi1>
    %25 = arith.ori %23, %24 : vector<16x128xi1>
    %c0_25 = arith.constant 0 : index
    %c0_26 = arith.constant 0 : index
    %26 = vector.load %arg8[%c0_25, %c0_26] : memref<8x1xf32, #tpu.memory_space<vmem>>, vector<8x1xf32>
    %cst_27 = arith.constant 5.000000e-01 : f32
    %27 = vector.broadcast %cst_27 : f32 to vector<8x1xf32>
    %28 = arith.cmpf ogt, %26, %27 : vector<8x1xf32>
    %c0_28 = arith.constant 0 : index
    %c0_29 = arith.constant 0 : index
    %29 = vector.load %arg9[%c0_28, %c0_29] : memref<1x64xf32, #tpu.memory_space<vmem>>, vector<1x64xf32>
    %cst_30 = arith.constant 5.000000e-01 : f32
    %30 = vector.broadcast %cst_30 : f32 to vector<1x64xf32>
    %31 = arith.cmpf ogt, %29, %30 : vector<1x64xf32>
    %32 = vector.broadcast %28 : vector<8x1xi1> to vector<8x64xi1>
    %33 = vector.broadcast %31 : vector<1x64xi1> to vector<8x64xi1>
    %34 = arith.ori %32, %33 : vector<8x64xi1>
    %35 = math.absf %5 : vector<16x128xf32>
    %cst_31 = arith.constant 0x7F800000 : f32
    %36 = vector.broadcast %cst_31 : f32 to vector<16x128xf32>
    %37 = arith.select %25, %35, %36 : vector<16x128xi1>, vector<16x128xf32>
    %c0_32 = arith.constant 0 : index
    %c0_33 = arith.constant 0 : index
    %c0_34 = arith.constant 0 : index
    %38 = vector.load %arg12[%c0_32, %c0_33, %c0_34] : memref<1x16x128xf32, #tpu.memory_space<vmem>>, vector<1x16x128xf32>
    %39 = vector.shape_cast %38 : vector<1x16x128xf32> to vector<16x128xf32>
    %40 = vector.shape_cast %37 : vector<16x128xf32> to vector<1x16x128xf32>
    tpu.vector_store %arg12[%c0_32, %c0_33, %c0_34], %40 {strides = array<i32>} : memref<1x16x128xf32, #tpu.memory_space<vmem>>, vector<1x16x128xf32>,
    %41 = math.absf %10 : vector<8x64xf32>
    %cst_35 = arith.constant 0x7F800000 : f32
    %42 = vector.broadcast %cst_35 : f32 to vector<8x64xf32>
    %43 = arith.select %34, %41, %42 : vector<8x64xi1>, vector<8x64xf32>
    %c0_36 = arith.constant 0 : index
    %c0_37 = arith.constant 0 : index
    %c0_38 = arith.constant 0 : index
    %44 = vector.load %arg13[%c0_36, %c0_37, %c0_38] : memref<1x8x64xf32, #tpu.memory_space<vmem>>, vector<1x8x64xf32>
    %45 = vector.shape_cast %44 : vector<1x8x64xf32> to vector<8x64xf32>
    %46 = vector.shape_cast %43 : vector<8x64xf32> to vector<1x8x64xf32>
    tpu.vector_store %arg13[%c0_36, %c0_37, %c0_38], %46 {strides = array<i32>} : memref<1x8x64xf32, #tpu.memory_space<vmem>>, vector<1x8x64xf32>,
    return
  }
  func.func @transform_0(%arg0: i32) -> (i32, i32, i32) {
    %c0_i32 = arith.constant 0 : i32
    %c0_i32_0 = arith.constant 0 : i32
    %c0_i32_1 = arith.constant 0 : i32
    return %arg0, %c0_i32, %c0_i32_0 : i32, i32, i32
  }
  func.func @transform_1(%arg0: i32) -> (i32, i32) {
    %c0_i32 = arith.constant 0 : i32
    %c0_i32_0 = arith.constant 0 : i32
    %c0_i32_1 = arith.constant 0 : i32
    return %c0_i32, %c0_i32_0 : i32, i32
  }
  func.func @transform_2(%arg0: i32) -> (i32, i32) {
    %c0_i32 = arith.constant 0 : i32
    %c0_i32_0 = arith.constant 0 : i32
    %c0_i32_1 = arith.constant 0 : i32
    return %c0_i32, %c0_i32_0 : i32, i32
  }
  func.func @transform_3(%arg0: i32) -> (i32, i32) {
    %c0_i32 = arith.constant 0 : i32
    %c0_i32_0 = arith.constant 0 : i32
    %c0_i32_1 = arith.constant 0 : i32
    return %c0_i32, %c0_i32_0 : i32, i32
  }
  func.func @transform_4(%arg0: i32) -> (i32, i32) {
    %c0_i32 = arith.constant 0 : i32
    %c0_i32_0 = arith.constant 0 : i32
    %c0_i32_1 = arith.constant 0 : i32
    return %c0_i32, %c0_i32_0 : i32, i32
  }
  func.func @transform_5(%arg0: i32) -> (i32, i32) {
    %c0_i32 = arith.constant 0 : i32
    %c0_i32_0 = arith.constant 0 : i32
    %c0_i32_1 = arith.constant 0 : i32
    return %c0_i32, %c0_i32_0 : i32, i32
  }
  func.func @transform_6(%arg0: i32) -> (i32, i32) {
    %c0_i32 = arith.constant 0 : i32
    %c0_i32_0 = arith.constant 0 : i32
    %c0_i32_1 = arith.constant 0 : i32
    return %c0_i32, %c0_i32_0 : i32, i32
  }
  func.func @transform_7(%arg0: i32) -> (i32, i32) {
    %c0_i32 = arith.constant 0 : i32
    %c0_i32_0 = arith.constant 0 : i32
    %c0_i32_1 = arith.constant 0 : i32
    return %c0_i32, %c0_i32_0 : i32, i32
  }
  func.func @transform_8(%arg0: i32) -> (i32, i32) {
    %c0_i32 = arith.constant 0 : i32
    %c0_i32_0 = arith.constant 0 : i32
    %c0_i32_1 = arith.constant 0 : i32
    return %c0_i32, %c0_i32_0 : i32, i32
  }
  func.func @transform_9(%arg0: i32) -> (i32, i32, i32) {
    %c0_i32 = arith.constant 0 : i32
    %c0_i32_0 = arith.constant 0 : i32
    %c0_i32_1 = arith.constant 0 : i32
    return %arg0, %c0_i32, %c0_i32_0 : i32, i32, i32
  }
  func.func @transform_10(%arg0: i32) -> (i32, i32, i32) {
    %c0_i32 = arith.constant 0 : i32
    %c0_i32_0 = arith.constant 0 : i32
    %c0_i32_1 = arith.constant 0 : i32
    return %arg0, %c0_i32, %c0_i32_0 : i32, i32, i32
  }
  func.func @transform_11(%arg0: i32) -> (i32, i32, i32) {
    %c0_i32 = arith.constant 0 : i32
    %c0_i32_0 = arith.constant 0 : i32
    %c0_i32_1 = arith.constant 0 : i32
    return %arg0, %c0_i32, %c0_i32_0 : i32, i32, i32
  }
  func.func @transform_12(%arg0: i32) -> (i32, i32, i32) {
    %c0_i32 = arith.constant 0 : i32
    %c0_i32_0 = arith.constant 0 : i32
    %c0_i32_1 = arith.constant 0 : i32
    return %arg0, %c0_i32, %c0_i32_0 : i32, i32, i32
  }
}

module attributes {stable_mosaic.version = 11 : i64} {
  func.func @dwt_kernel(%arg0: i32, %arg1: memref<1x16x128xf32, #tpu.memory_space<vmem>>, %arg2: memref<16x16xf32, #tpu.memory_space<vmem>>, %arg3: memref<128x128xf32, #tpu.memory_space<vmem>>, %arg4: memref<8x8xf32, #tpu.memory_space<vmem>>, %arg5: memref<128x64xf32, #tpu.memory_space<vmem>>, %arg6: memref<16x1xf32, #tpu.memory_space<vmem>>, %arg7: memref<1x128xf32, #tpu.memory_space<vmem>>, %arg8: memref<8x1xf32, #tpu.memory_space<vmem>>, %arg9: memref<1x64xf32, #tpu.memory_space<vmem>>, %arg10: memref<1x16x128xf32, #tpu.memory_space<vmem>>, %arg11: memref<1x8x64xf32, #tpu.memory_space<vmem>>, %arg12: memref<1x16x128xf32, #tpu.memory_space<vmem>>, %arg13: memref<1x8x64xf32, #tpu.memory_space<vmem>>) attributes {dimension_semantics = [#tpu.dimension_semantics<parallel>], iteration_bounds = array<i64: 1>, scalar_prefetch = 0 : i64, scratch_operands = 0 : i64, tpu.core_type = #tpu.core_type<tc>, window_params = [{transform_indices = @transform_0, window_bounds = array<i64: 1, 16, 128>}, {pipeline_mode = #tpu.pipeline_mode<synchronous>, transform_indices = @transform_1, window_bounds = array<i64: 16, 16>}, {pipeline_mode = #tpu.pipeline_mode<synchronous>, transform_indices = @transform_2, window_bounds = array<i64: 128, 128>}, {pipeline_mode = #tpu.pipeline_mode<synchronous>, transform_indices = @transform_3, window_bounds = array<i64: 8, 8>}, {pipeline_mode = #tpu.pipeline_mode<synchronous>, transform_indices = @transform_4, window_bounds = array<i64: 128, 64>}, {pipeline_mode = #tpu.pipeline_mode<synchronous>, transform_indices = @transform_5, window_bounds = array<i64: 16, 1>}, {pipeline_mode = #tpu.pipeline_mode<synchronous>, transform_indices = @transform_6, window_bounds = array<i64: 1, 128>}, {pipeline_mode = #tpu.pipeline_mode<synchronous>, transform_indices = @transform_7, window_bounds = array<i64: 8, 1>}, {pipeline_mode = #tpu.pipeline_mode<synchronous>, transform_indices = @transform_8, window_bounds = array<i64: 1, 64>}, {transform_indices = @transform_9, window_bounds = array<i64: 1, 16, 128>}, {transform_indices = @transform_10, window_bounds = array<i64: 1, 8, 64>}, {transform_indices = @transform_11, window_bounds = array<i64: 1, 16, 128>}, {transform_indices = @transform_12, window_bounds = array<i64: 1, 8, 64>}]} {
    %c0 = arith.constant 0 : index
    %c0_0 = arith.constant 0 : index
    %c0_1 = arith.constant 0 : index
    %0 = vector.load %arg1[%c0, %c0_0, %c0_1] : memref<1x16x128xf32, #tpu.memory_space<vmem>>, vector<1x16x128xf32>
    %1 = vector.shape_cast %0 : vector<1x16x128xf32> to vector<16x128xf32>
    %c0_2 = arith.constant 0 : index
    %c0_3 = arith.constant 0 : index
    %2 = vector.load %arg2[%c0_2, %c0_3] : memref<16x16xf32, #tpu.memory_space<vmem>>, vector<16x16xf32>
    %cst = arith.constant dense<0.000000e+00> : vector<16x128xf32>
    %3 = tpu.matmul %2, %1, %cst {dimension_numbers = #tpu.dot_dimension_numbers<[1], [0], [0], [1], [0, 0, 1, 1], [], []>} : vector<16x16xf32>, vector<16x128xf32>, vector<16x128xf32> -> vector<16x128xf32>
    %c0_4 = arith.constant 0 : index
    %c0_5 = arith.constant 0 : index
    %4 = vector.load %arg3[%c0_4, %c0_5] : memref<128x128xf32, #tpu.memory_space<vmem>>, vector<128x128xf32>
    %cst_6 = arith.constant dense<0.000000e+00> : vector<16x128xf32>
    %5 = tpu.matmul %3, %4, %cst_6 {dimension_numbers = #tpu.dot_dimension_numbers<[1], [0], [0], [1], [0, 0, 1, 1], [], []>} : vector<16x128xf32>, vector<128x128xf32>, vector<16x128xf32> -> vector<16x128xf32>
    %6 = vector.extract_strided_slice %5 {offsets = [0, 0], sizes = [8, 128], strides = [1, 1]} : vector<16x128xf32> to vector<8x128xf32>
    %c0_7 = arith.constant 0 : index
    %c0_8 = arith.constant 0 : index
    %7 = vector.load %arg4[%c0_7, %c0_8] : memref<8x8xf32, #tpu.memory_space<vmem>>, vector<8x8xf32>
    %c0_9 = arith.constant 0 : index
    %c0_10 = arith.constant 0 : index
    %8 = vector.load %arg5[%c0_9, %c0_10] : memref<128x64xf32, #tpu.memory_space<vmem>>, vector<128x64xf32>
    %cst_11 = arith.constant dense<0.000000e+00> : vector<8x64xf32>
    %9 = tpu.matmul %6, %8, %cst_11 {dimension_numbers = #tpu.dot_dimension_numbers<[1], [0], [0], [1], [0, 0, 1, 1], [], []>} : vector<8x128xf32>, vector<128x64xf32>, vector<8x64xf32> -> vector<8x64xf32>
    %cst_12 = arith.constant dense<0.000000e+00> : vector<8x64xf32>
    %10 = tpu.matmul %7, %9, %cst_12 {dimension_numbers = #tpu.dot_dimension_numbers<[1], [0], [0], [1], [0, 0, 1, 1], [], []>} : vector<8x8xf32>, vector<8x64xf32>, vector<8x64xf32> -> vector<8x64xf32>
    %c0_13 = arith.constant 0 : index
    %c0_14 = arith.constant 0 : index
    %c0_15 = arith.constant 0 : index
    %11 = vector.load %arg10[%c0_13, %c0_14, %c0_15] : memref<1x16x128xf32, #tpu.memory_space<vmem>>, vector<1x16x128xf32>
    %12 = vector.shape_cast %11 : vector<1x16x128xf32> to vector<16x128xf32>
    %13 = vector.shape_cast %5 : vector<16x128xf32> to vector<1x16x128xf32>
    tpu.vector_store %arg10[%c0_13, %c0_14, %c0_15], %13 {strides = array<i32>} : memref<1x16x128xf32, #tpu.memory_space<vmem>>, vector<1x16x128xf32>,
    %c0_16 = arith.constant 0 : index
    %c0_17 = arith.constant 0 : index
    %c0_18 = arith.constant 0 : index
    %14 = vector.load %arg11[%c0_16, %c0_17, %c0_18] : memref<1x8x64xf32, #tpu.memory_space<vmem>>, vector<1x8x64xf32>
    %15 = vector.shape_cast %14 : vector<1x8x64xf32> to vector<8x64xf32>
    %16 = vector.shape_cast %10 : vector<8x64xf32> to vector<1x8x64xf32>
    tpu.vector_store %arg11[%c0_16, %c0_17, %c0_18], %16 {strides = array<i32>} : memref<1x8x64xf32, #tpu.memory_space<vmem>>, vector<1x8x64xf32>,
    %c0_19 = arith.constant 0 : index
    %c0_20 = arith.constant 0 : index
    %17 = vector.load %arg6[%c0_19, %c0_20] : memref<16x1xf32, #tpu.memory_space<vmem>>, vector<16x1xf32>
    %cst_21 = arith.constant 5.000000e-01 : f32
    %18 = vector.broadcast %cst_21 : f32 to vector<16x1xf32>
    %19 = arith.cmpf ogt, %17, %18 : vector<16x1xf32>
    %c0_22 = arith.constant 0 : index
    %c0_23 = arith.constant 0 : index
    %20 = vector.load %arg7[%c0_22, %c0_23] : memref<1x128xf32, #tpu.memory_space<vmem>>, vector<1x128xf32>
    %cst_24 = arith.constant 5.000000e-01 : f32
    %21 = vector.broadcast %cst_24 : f32 to vector<1x128xf32>
    %22 = arith.cmpf ogt, %20, %21 : vector<1x128xf32>
    %23 = vector.broadcast %19 : vector<16x1xi1> to vector<16x128xi1>
    %24 = vector.broadcast %22 : vector<1x128xi1> to vector<16x128xi1>
    %25 = arith.ori %23, %24 : vector<16x128xi1>
    %c0_25 = arith.constant 0 : index
    %c0_26 = arith.constant 0 : index
    %26 = vector.load %arg8[%c0_25, %c0_26] : memref<8x1xf32, #tpu.memory_space<vmem>>, vector<8x1xf32>
    %cst_27 = arith.constant 5.000000e-01 : f32
    %27 = vector.broadcast %cst_27 : f32 to vector<8x1xf32>
    %28 = arith.cmpf ogt, %26, %27 : vector<8x1xf32>
    %c0_28 = arith.constant 0 : index
    %c0_29 = arith.constant 0 : index
    %29 = vector.load %arg9[%c0_28, %c0_29] : memref<1x64xf32, #tpu.memory_space<vmem>>, vector<1x64xf32>
    %cst_30 = arith.constant 5.000000e-01 : f32
    %30 = vector.broadcast %cst_30 : f32 to vector<1x64xf32>
    %31 = arith.cmpf ogt, %29, %30 : vector<1x64xf32>
    %32 = vector.broadcast %28 : vector<8x1xi1> to vector<8x64xi1>
    %33 = vector.broadcast %31 : vector<1x64xi1> to vector<8x64xi1>
    %34 = arith.ori %32, %33 : vector<8x64xi1>
    %35 = math.absf %5 : vector<16x128xf32>
    %cst_31 = arith.constant 0x7F800000 : f32
    %36 = vector.broadcast %cst_31 : f32 to vector<16x128xf32>
    %37 = arith.select %25, %35, %36 : vector<16x128xi1>, vector<16x128xf32>
    %c0_32 = arith.constant 0 : index
    %c0_33 = arith.constant 0 : index
    %c0_34 = arith.constant 0 : index
    %38 = vector.load %arg12[%c0_32, %c0_33, %c0_34] : memref<1x16x128xf32, #tpu.memory_space<vmem>>, vector<1x16x128xf32>
    %39 = vector.shape_cast %38 : vector<1x16x128xf32> to vector<16x128xf32>
    %40 = vector.shape_cast %37 : vector<16x128xf32> to vector<1x16x128xf32>
    tpu.vector_store %arg12[%c0_32, %c0_33, %c0_34], %40 {strides = array<i32>} : memref<1x16x128xf32, #tpu.memory_space<vmem>>, vector<1x16x128xf32>,
    %41 = math.absf %10 : vector<8x64xf32>
    %cst_35 = arith.constant 0x7F800000 : f32
    %42 = vector.broadcast %cst_35 : f32 to vector<8x64xf32>
    %43 = arith.select %34, %41, %42 : vector<8x64xi1>, vector<8x64xf32>
    %c0_36 = arith.constant 0 : index
    %c0_37 = arith.constant 0 : index
    %c0_38 = arith.constant 0 : index
    %44 = vector.load %arg13[%c0_36, %c0_37, %c0_38] : memref<1x8x64xf32, #tpu.memory_space<vmem>>, vector<1x8x64xf32>
    %45 = vector.shape_cast %44 : vector<1x8x64xf32> to vector<8x64xf32>
    %46 = vector.shape_cast %43 : vector<8x64xf32> to vector<1x8x64xf32>
    tpu.vector_store %arg13[%c0_36, %c0_37, %c0_38], %46 {strides = array<i32>} : memref<1x8x64xf32, #tpu.memory_space<vmem>>, vector<1x8x64xf32>,
    return
  }
  func.func @transform_0(%arg0: i32) -> (i32, i32, i32) {
    %c0_i32 = arith.constant 0 : i32
    %c0_i32_0 = arith.constant 0 : i32
    %c0_i32_1 = arith.constant 0 : i32
    return %arg0, %c0_i32, %c0_i32_0 : i32, i32, i32
  }
  func.func @transform_1(%arg0: i32) -> (i32, i32) {
    %c0_i32 = arith.constant 0 : i32
    %c0_i32_0 = arith.constant 0 : i32
    %c0_i32_1 = arith.constant 0 : i32
    return %c0_i32, %c0_i32_0 : i32, i32
  }
  func.func @transform_2(%arg0: i32) -> (i32, i32) {
    %c0_i32 = arith.constant 0 : i32
    %c0_i32_0 = arith.constant 0 : i32
    %c0_i32_1 = arith.constant 0 : i32
    return %c0_i32, %c0_i32_0 : i32, i32
  }
  func.func @transform_3(%arg0: i32) -> (i32, i32) {
    %c0_i32 = arith.constant 0 : i32
    %c0_i32_0 = arith.constant 0 : i32
    %c0_i32_1 = arith.constant 0 : i32
    return %c0_i32, %c0_i32_0 : i32, i32
  }
  func.func @transform_4(%arg0: i32) -> (i32, i32) {
    %c0_i32 = arith.constant 0 : i32
    %c0_i32_0 = arith.constant 0 : i32
    %c0_i32_1 = arith.constant 0 : i32
    return %c0_i32, %c0_i32_0 : i32, i32
  }
  func.func @transform_5(%arg0: i32) -> (i32, i32) {
    %c0_i32 = arith.constant 0 : i32
    %c0_i32_0 = arith.constant 0 : i32
    %c0_i32_1 = arith.constant 0 : i32
    return %c0_i32, %c0_i32_0 : i32, i32
  }
  func.func @transform_6(%arg0: i32) -> (i32, i32) {
    %c0_i32 = arith.constant 0 : i32
    %c0_i32_0 = arith.constant 0 : i32
    %c0_i32_1 = arith.constant 0 : i32
    return %c0_i32, %c0_i32_0 : i32, i32
  }
  func.func @transform_7(%arg0: i32) -> (i32, i32) {
    %c0_i32 = arith.constant 0 : i32
    %c0_i32_0 = arith.constant 0 : i32
    %c0_i32_1 = arith.constant 0 : i32
    return %c0_i32, %c0_i32_0 : i32, i32
  }
  func.func @transform_8(%arg0: i32) -> (i32, i32) {
    %c0_i32 = arith.constant 0 : i32
    %c0_i32_0 = arith.constant 0 : i32
    %c0_i32_1 = arith.constant 0 : i32
    return %c0_i32, %c0_i32_0 : i32, i32
  }
  func.func @transform_9(%arg0: i32) -> (i32, i32, i32) {
    %c0_i32 = arith.constant 0 : i32
    %c0_i32_0 = arith.constant 0 : i32
    %c0_i32_1 = arith.constant 0 : i32
    return %arg0, %c0_i32, %c0_i32_0 : i32, i32, i32
  }
  func.func @transform_10(%arg0: i32) -> (i32, i32, i32) {
    %c0_i32 = arith.constant 0 : i32
    %c0_i32_0 = arith.constant 0 : i32
    %c0_i32_1 = arith.constant 0 : i32
    return %arg0, %c0_i32, %c0_i32_0 : i32, i32, i32
  }
  func.func @transform_11(%arg0: i32) -> (i32, i32, i32) {
    %c0_i32 = arith.constant 0 : i32
    %c0_i32_0 = arith.constant 0 : i32
    %c0_i32_1 = arith.constant 0 : i32
    return %arg0, %c0_i32, %c0_i32_0 : i32, i32, i32
  }
  func.func @transform_12(%arg0: i32) -> (i32, i32, i32) {
    %c0_i32 = arith.constant 0 : i32
    %c0_i32_0 = arith.constant 0 : i32
    %c0_i32_1 = arith.constant 0 : i32
    return %arg0, %c0_i32, %c0_i32_0 : i32, i32, i32
  }
}

</mosaic_0001>

<bundles_post_ra>
// kernel: tpu_custom_call.1
= control target key start
LH: loop header
LB: loop body
LE: loop exit
PB: predicated region body
PF: predicated region fallthrough
CT: control target
= control target key end

     0   :  { %18 = vsyncpa [#allocation3], 0  ;;  %s939_s0 = inlined_call_operand.vmem [shape: f32[1,16,128], index: 0, kind: input, shape index: {}]   ;;  %s940_s1 = inlined_call_operand.vmem [shape: f32[16,16], index: 1, kind: input, shape index: {}]   ;;  %s941_s2 = inlined_call_operand.vmem [shape: f32[128,128], index: 2, kind: input, shape index: {}]   ;;  %s942_s3 = inlined_call_operand.vmem [shape: f32[8,8], index: 3, kind: input, shape index: {}]   ;;  %s943_s4 = inlined_call_operand.vmem [shape: f32[128,64], index: 4, kind: input, shape index: {}]   ;;  %s944_s5 = inlined_call_operand.vmem [shape: f32[16,1], index: 5, kind: input, shape index: {}]   ;;  %s945_s6 = inlined_call_operand.vmem [shape: f32[1,128], index: 6, kind: input, shape index: {}]   ;;  %s946_s7 = inlined_call_operand.vmem [shape: f32[8,1], index: 7, kind: input, shape index: {}]   ;;  %s947_s8 = inlined_call_operand.vmem [shape: f32[1,64], index: 8, kind: input, shape index: {}]   ;;  %s948_s9 = inlined_call_operand.hbm [shape: f32[1,16,128], index: 9, kind: output, shape index: {0}]   ;;  %s949_s10 = inlined_call_operand.hbm [shape: f32[1,8,64], index: 10, kind: output, shape index: {1}]   ;;  %s950_s11 = inlined_call_operand.hbm [shape: f32[1,16,128], index: 11, kind: output, shape index: {2}]   ;;  %s951_s12 = inlined_call_operand.hbm [shape: f32[1,8,64], index: 12, kind: output, shape index: {3}]  }
   0x1   :  { %19 = vsyncpa [#allocation5], 0  ;;  %v40_v0 = vld [vmem:[%s939_s0 + $0x8] sm:$0xff]  ;;  %v39_v1 = vld [vmem:[%s939_s0] sm:$0xff]  ;;  %vm43_vm0 = vcmask 130048  }
   0x2   :  { %v41_v2 = vld [vmem:[%s940_s1] sm:$0xff]  ;;  %533 = vmatprep.subr.mxu0 %v40_v0  ;;  %v140_v3 = vld [vmem:[%s941_s2 + $0x78] sm:$0xff]  ;;  %v139_v4 = vld [vmem:[%s941_s2 + $0x70] sm:$0xff] }
   0x3   :  { %537 = vmatprep.mubr.msk.f32.mxu0 %vm43_vm0, %v41_v2  ;;  %534 = vmatpush3.msra.mxu0 %v40_v0  ;;  %v42_v5 = vld [vmem:[%s940_s1 + $0x8] sm:$0xff]  ;;  %v137_v7 = vld [vmem:[%s941_s2 + $0x60] sm:$0xff] }
   0x4   :  { %540 = vmatprep.subr.mxu1 %v140_v3  ;;  %535 = vmatprep.subr.mxu0 %v39_v1  ;;  %v138_v6 = vld [vmem:[%s941_s2 + $0x68] sm:$0xff] }
   0x5   :  { %541 = vmatpush3.msra.mxu1 %v140_v3  ;;  %536 = vmatpush3.msra.mxu0 %v39_v1 }
   0x6   :  { %542 = vmatprep.subr.mxu1 %v139_v4  ;;  %538 = vmatmul.mubr.msk.f32.vlgmr.msra.gmra.mxu0 %vm43_vm0, %v42_v5 }
   0x7   :  { %543 = vmatpush3.msra.mxu1 %v139_v4 }
   0x8   :  { %544 = vmatprep.subr.mxu1 %v138_v6 }
   0x9   :  { %20 = vsyncpa [#allocation8], 0  ;;  %545 = vmatpush3.msra.mxu1 %v138_v6  ;;  %v136_v8 = vld [vmem:[%s941_s2 + $0x58] sm:$0xff]  ;;  %v135_v9 = vld [vmem:[%s941_s2 + $0x50] sm:$0xff]  ;;  %v712_v23 = vmov 0   ;;  %v713_v24 = vmov 0.0   ;;  %v398_v44 = vlaneseq }
   0xa   :  { %546 = vmatprep.subr.mxu1 %v137_v7  ;;  %v134_v10 = vld [vmem:[%s941_s2 + $0x48] sm:$0xff]  ;;  %v133_v11 = vld [vmem:[%s941_s2 + $0x40] sm:$0xff]  ;;  %v132_v12 = vld [vmem:[%s941_s2 + $0x38] sm:$0xff]  ;;  %624 = vset.pattern.permute.xlu0 %v712_v23  ;;  %vm714_vm3 = vmmov 0   ;;  %vm303_vm11 = vcmask 64512   ;;  %s715_s18 = smov [#allocation2]  }
   0xb   :  { %547 = vmatpush3.msra.mxu1 %v137_v7  ;;  %v131_v13 = vld [vmem:[%s941_s2 + $0x30] sm:$0xff]  ;;  %v130_v14 = vld [vmem:[%s941_s2 + $0x28] sm:$0xff]  ;;  %v129_v15 = vld [vmem:[%s941_s2 + $0x20] sm:$0xff]  ;;  %575 = vmatprep.subr.mxu0 %v713_v24  ;;  %v399_v46 = vshrl.u32 %v398_v44, 7  ;;  %s435_s1 = sshll.u32 %s715_s18, 4  ;;  %s436_s1 = int_to_ptr.vmem [resolvable:$true] %s435_s1 }
   0xc   :  { %548 = vmatprep.subr.mxu1 %v136_v8  ;;  %v128_v16 = vld [vmem:[%s941_s2 + $0x18] sm:$0xff]  ;;  %v127_v17 = vld [vmem:[%s941_s2 + $0x10] sm:$0xff]  ;;  %v126_v18 = vld [vmem:[%s941_s2 + $0x8] sm:$0xff]  ;;  %625 = vset.pattern.permute.xlu1 %v712_v23  ;;  %s626_s19 = scalar_lea.vmem %s436_s1, 256  ;;  %p631_p1 = scmp.lt.s32.totalorder %s436_s1, %s436_s1 }
   0xd   :  { %549 = vmatpush3.msra.mxu1 %v136_v8  ;;  %v125_v19 = vld [vmem:[%s941_s2] sm:$0xff]  ;;  %v382_v21 = vld [vmem:[%s944_s5 + $0x8] sm:$0xff]  ;;  %v232_v22 = vld [vmem:[%s943_s4 + $0x78] sm:$0xff]  ;;  %607 = vmatprep.mubr.msk.f32.mxu0 %vm714_vm3, %v713_v24  ;;  %v400_v48 = vsub.s32 0, %v399_v46  ;;  %p627_p0 = scmp.ne.s32.totalorder %s436_s1, %s626_s19  ;;  %p632_p2 = scmp.lt.s32.totalorder %s626_s19, %s626_s19 }
   0xe   :  { %550 = vmatprep.subr.mxu1 %v135_v9  ;;  %v381_v20 = vld [vmem:[%s944_s5] sm:$0xff]  ;;  %vm384_vm2 = vcmp.gt.f32.partialorder %v382_v21, 0.5  ;;  %v231_v25 = vld [vmem:[%s943_s4 + $0x70] sm:$0xff]  ;;  %576 = vmatpush3.msra.mxu0 %v232_v22  ;;  %v230_v27 = vld [vmem:[%s943_s4 + $0x68] sm:$0xff] }
   0xf   :  { %551 = vmatpush3.msra.mxu1 %v135_v9  ;;  %vm383_vm1 = vcmp.gt.f32.partialorder %v381_v20, 0.5  ;;  %577 = vmatprep.subr.mxu0 %v713_v24  ;;  %v388_v28 = vsel %vm384_vm2, 1, %v712_v23  ;;  %v229_v29 = vld [vmem:[%s943_s4 + $0x60] sm:$0xff]  ;;  %v228_v30 = vld [vmem:[%s943_s4 + $0x58] sm:$0xff]  ;;  %v227_v31 = vld [vmem:[%s943_s4 + $0x50] sm:$0xff]  ;;  %p633_p3 = por %p632_p2, %p631_p1 }
  0x10   :  { %552 = vmatprep.subr.mxu1 %v134_v10  ;;  %v387_v26 = vsel %vm383_vm1, 1, %v712_v23  ;;  %578 = vmatpush3.msra.mxu0 %v231_v25  ;;  %v226_v32 = vld [vmem:[%s943_s4 + $0x48] sm:$0xff]  ;;  %v225_v33 = vld [vmem:[%s943_s4 + $0x40] sm:$0xff]  ;;  %v224_v34 = vld [vmem:[%s943_s4 + $0x38] sm:$0xff] }
  0x11   :  { %553 = vmatpush3.msra.mxu1 %v134_v10  ;;  %390 = vperm.xlu0 %624, %v387_v26   ;;  %v223_v35 = vld [vmem:[%s943_s4 + $0x30] sm:$0xff]  ;;  %v222_v36 = vld [vmem:[%s943_s4 + $0x28] sm:$0xff]  ;;  %v221_v37 = vld [vmem:[%s943_s4 + $0x20] sm:$0xff]  ;;  %p634_p4 = pnand %p633_p3, %p627_p0 }
  0x12   :  { %554 = vmatprep.subr.mxu1 %v133_v11  ;;  %579 = vmatprep.subr.mxu0 %v713_v24  ;;  %v220_v38 = vld [vmem:[%s943_s4 + $0x18] sm:$0xff]  ;;  %v219_v39 = vld [vmem:[%s943_s4 + $0x10] sm:$0xff]  ;;  %v218_v42 = vld [vmem:[%s943_s4 + $0x8] sm:$0xff] }
  0x13   :  { %555 = vmatpush3.msra.mxu1 %v133_v11  ;;  %580 = vmatpush3.msra.mxu0 %v230_v27  ;;  %v217_v43 = vld [vmem:[%s943_s4] sm:$0xff] }
  0x14   :  { %556 = vmatprep.subr.mxu1 %v132_v12  ;;  %581 = vmatprep.subr.mxu0 %v713_v24  ;;  %v385_v45 = vld [vmem:[%s945_s6] sm:$0x1] }
  0x15   :  { %557 = vmatpush3.msra.mxu1 %v132_v12  ;;  %393 = vperm.xlu0 %624, %v388_v28   ;;  %vm386_vm4 = vcmp.gt.f32.partialorder %v385_v45, 0.5  ;;  %v405_v58 = vld [vmem:[%s946_s7] sm:$0xff] }
  0x16   :  { %558 = vmatprep.subr.mxu1 %v131_v13  ;;  %582 = vmatpush3.msra.mxu0 %v229_v29  ;;  %v397_v49 = vsel %vm386_vm4, 1, %v712_v23  ;;  %vm406_vm10 = vcmp.gt.f32.partialorder %v405_v58, 0.5  ;;  %v216_v60 = vld [vmem:[%s942_s3] sm:$0xff] }
  0x17   :  { %559 = vmatpush3.msra.mxu1 %v131_v13  ;;  %583 = vmatprep.subr.mxu0 %v713_v24  ;;  %v401_v50 = vrot.slane %v397_v49, %v400_v48  ;;  %v409_v59 = vsel %vm406_vm10, 1, %v712_v23 }
  0x18   :  { %560 = vmatprep.subr.mxu1 %v130_v14  ;;  %584 = vmatpush3.msra.mxu0 %v228_v30 }
  0x19   :  { %561 = vmatpush3.msra.mxu1 %v130_v14  ;;  %585 = vmatprep.subr.mxu0 %v713_v24  ;;  %vm402_vm5 = vcmp.eq.s32.totalorder %v401_v50, 1 }
  0x1a   :  { %562 = vmatprep.subr.mxu1 %v129_v15  ;;  %586 = vmatpush3.msra.mxu0 %v227_v31 }
  0x1b   :  { %563 = vmatpush3.msra.mxu1 %v129_v15  ;;  %587 = vmatprep.subr.mxu0 %v713_v24 }
  0x1c   :  { %564 = vmatprep.subr.mxu1 %v128_v16  ;;  %588 = vmatpush3.msra.mxu0 %v226_v32 }
  0x1d   :  { %565 = vmatpush3.msra.mxu1 %v128_v16  ;;  %589 = vmatprep.subr.mxu0 %v713_v24 }
  0x1e   :  { %566 = vmatprep.subr.mxu1 %v127_v17  ;;  %590 = vmatpush3.msra.mxu0 %v225_v33 }
  0x1f   :  { %567 = vmatpush3.msra.mxu1 %v127_v17  ;;  %591 = vmatprep.subr.mxu0 %v713_v24 }
  0x20   :  { %568 = vmatprep.subr.mxu1 %v126_v18  ;;  %592 = vmatpush3.msra.mxu0 %v224_v34 }
  0x21   :  { %569 = vmatpush3.msra.mxu1 %v126_v18  ;;  %593 = vmatprep.subr.mxu0 %v713_v24 }
  0x22   :  { %570 = vmatprep.subr.mxu1 %v125_v19  ;;  %594 = vmatpush3.msra.mxu0 %v223_v35 }
  0x23   :  { %571 = vmatpush3.msra.mxu1 %v125_v19  ;;  %595 = vmatprep.subr.mxu0 %v713_v24 }
  0x24   :  { %610 = vmatprep.subr.mxu1 %v713_v24  ;;  %596 = vmatpush3.msra.mxu0 %v222_v36 }
  0x25   :  { %597 = vmatprep.subr.mxu0 %v713_v24  ;;  %411 = vperm.xlu1 %625, %v409_v59  }
  0x26   :  { %598 = vmatpush3.msra.mxu0 %v221_v37 }
  0x27   :  { %599 = vmatprep.subr.mxu0 %v713_v24 }
  0x28   :  { %600 = vmatpush3.msra.mxu0 %v220_v38 }
  0x29   :  { %601 = vmatprep.subr.mxu0 %v713_v24 }
  0x2a   :  { %602 = vmatpush3.msra.mxu0 %v219_v39 }
  0x2b   :  { %603 = vmatprep.subr.mxu0 %v713_v24 }
  0x2c   :  { %604 = vmatpush3.msra.mxu0 %v218_v42 }
  0x2d   :  { %605 = vmatprep.subr.mxu0 %v713_v24 }
  0x2e   :  { %606 = vmatpush3.msra.mxu0 %v217_v43 }
  0x8c   :  { %v391_v47 = vpop.permute.xlu0 %390 }
  0x8d   :  { %vm395_vm7 = vcmp.eq.s32.totalorder %v391_v47, 1 }
  0x8e   :  { %vm403_vm9 = vmor %vm395_vm7, %vm402_vm5 }
  0x90   :  { %v394_v51 = vpop.permute.xlu0 %393 }
  0x91   :  { %vm396_vm6 = vcmp.eq.s32.totalorder %v394_v51, 1 }
  0x92   :  { %vm404_vm8 = vmor %vm396_vm6, %vm402_vm5 }
  0xc6   :  { %v539_v40 = vpop.f32.mrf.mxu0 }
  0xc8   :  { %v116_v41 = vpop.f32.mrf.mxu0 }
  0xc9   :  { %572 = vmatprep.mubr.f32.mxu1 %v116_v41 }
  0xca   :  { %573 = vmatmul.mubr.f32.vlgmr.msra.gmra.mxu1 %v539_v40 }
  0xcb   :  { %612 = vmatprep.mubr.msk.f32.mxu1 %vm714_vm3, %v713_v24 }
 0x18a   :  { %v574_v52 = vpop.f32.mrf.mxu1 }
 0x18b   :  { %378 = vst [vmem:[#allocation2 + $0x8] sm:$0xff] %v574_v52  ;;  %v422_v53 = vand.u32 2147483647, %v574_v52 }
 0x18c   :  { %v207_v54 = vpop.f32.mrf.mxu1 }
 0x18d   :  { %v424_v55 = vsel %vm404_vm8, %v422_v53, inf  ;;  %377 = vst [vmem:[#allocation2] sm:$0xff] %v207_v54  ;;  %v421_v56 = vand.u32 2147483647, %v207_v54  ;;  %608 = vmatmul.mubr.f32.vlgmr.msra.gmra.mxu0 %v207_v54 }
 0x18e   :  { %426 = vst [vmem:[#allocation6 + $0x8] sm:$0xff] %v424_v55 }
 0x18f   :  { %v423_v57 = vsel %vm403_vm9, %v421_v56, inf }
 0x190   :  { %425 = vst [vmem:[#allocation6] sm:$0xff] %v423_v57 }
 0x24d   :  { %v299_v61 = vpop.f32.mrf.mxu0 }
 0x24e   :  { %611 = vmatpush3.msra.mxu1 %v299_v61 }
 0x24f   :  { %v609_v62 = vpop.f32.mrf.mxu0  ;;  %613 = vmatmul.mubr.msk.f32.vlgmr.msra.gmra.mxu1 %vm303_vm11, %v216_v60 }
 0x250   :  { %637 = shalt.err (!%p634_p4)
}
 0x251   :  { %s716_s7 = smov 128   ;;  %s717_s20 = smov 8   ;;  %v407_v63 = vld [vmem:[%s947_s8] sm:$0x1]  ;;  %v412_v2 = vpop.permute.xlu1 %411  ;;  %vm379_vm15 = vcmask 523264  }
 0x252   :  { %441 = dma.vmem_to_hbm [thread:$0]  %s436_s1, 256, %s948_s9, [#allocation3], %s716_s7, %s716_s7, %s717_s20   ;;  %vm408_vm12 = vcmp.gt.f32.partialorder %v407_v63, 0.5  ;;  %vm413_vm14 = vcmp.eq.s32.totalorder %v412_v2, 1 }
 0x253   :  { %v414_v0 = vsel %vm408_vm12, 1, %v712_v23  ;;  %s718_s24 = smov [#allocation4]   ;;  %s719_s26 = smov [#allocation6]  }
 0x254   :  { %v418_v1 = vrot.slane %v414_v0, %v400_v48  ;;  %s448_s25 = sshll.u32 %s718_s24, 4  ;;  %s457_s2 = sshll.u32 %s719_s26, 4  ;;  %s449_s25 = int_to_ptr.vmem [resolvable:$true] %s448_s25  ;;  %s458_s2 = int_to_ptr.vmem [resolvable:$true] %s457_s2 }
 0x255   :  { %s720_s27 = smov [#allocation7]   ;;  %s646_s8 = scalar_lea.vmem %s449_s25, 128 }
 0x256   :  { %vm419_vm13 = vcmp.eq.s32.totalorder %v418_v1, 1  ;;  %s470_s5 = sshll.u32 %s720_s27, 4  ;;  %p647_p5 = scmp.ne.s32.totalorder %s449_s25, %s646_s8  ;;  %s471_s5 = int_to_ptr.vmem [resolvable:$true] %s470_s5 }
 0x257   :  { %vm420_vm0 = vmor %vm413_vm14, %vm419_vm13  ;;  %p651_p6 = scmp.lt.s32.totalorder %s449_s25, %s449_s25  ;;  %p652_p7 = scmp.lt.s32.totalorder %s646_s8, %s646_s8 }
 0x259   :  { %p653_p8 = por %p652_p7, %p651_p6 }
 0x25b   :  { %p654_p9 = pnand %p653_p8, %p647_p5 }
 0x30f   :  { %v373_v3 = vpop.f32.mrf.mxu1 }
 0x310   :  { %v427_v4 = vand.u32 2147483647, %v373_v3  ;;  %380 = vst.msk [vmem:[#allocation4] sm:$0xff] %vm379_vm15, %v373_v3 }
 0x311   :  { %v614_v5 = vpop.f32.mrf.mxu1 }
 0x312   :  { %657 = shalt.err (!%p654_p9)
}
 0x313   :  { %451 = dma.vmem_to_hbm [thread:$0]  %s449_s25, 128, %s949_s10, [#allocation5]   ;;  %v428_v6 = vsel %vm420_vm0, %v427_v4, inf }
 0x314   :  { %s666_s29 = scalar_lea.vmem %s458_s2, 256  ;;  %p671_p11 = scmp.lt.s32.totalorder %s458_s2, %s458_s2 }
 0x315   :  { %p667_p10 = scmp.ne.s32.totalorder %s458_s2, %s666_s29  ;;  %p672_p12 = scmp.lt.s32.totalorder %s666_s29, %s666_s29 }
 0x317   :  { %p673_p13 = por %p672_p12, %p671_p11 }
 0x319   :  { %p674_p0 = pnand %p673_p13, %p667_p10 }
 0x31b   :  { %677 = shalt.err (!%p674_p0)
}
 0x31c   :  { %463 = dma.vmem_to_hbm [thread:$0]  %s458_s2, 256, %s950_s11, [#allocation5], %s716_s7, %s716_s7, %s717_s20   ;;  %429 = vst.msk [vmem:[#allocation7] sm:$0xff] %vm379_vm15, %v428_v6 }
 0x31d   :  { %s686_s14 = scalar_lea.vmem %s471_s5, 128  ;;  %p691_p2 = scmp.lt.s32.totalorder %s471_s5, %s471_s5 }
 0x31e   :  { %p687_p1 = scmp.ne.s32.totalorder %s471_s5, %s686_s14  ;;  %p692_p3 = scmp.lt.s32.totalorder %s686_s14, %s686_s14 }
 0x320   :  { %p693_p4 = por %p692_p3, %p691_p2 }
 0x322   :  { %p694_p5 = pnand %p693_p4, %p687_p1 }
 0x324   :  { %697 = shalt.err (!%p694_p5)
}
 0x325   :  { %473 = dma.vmem_to_hbm [thread:$0]  %s471_s5, 128, %s951_s12, [#allocation8]  }
 0x326   :  { %706 = dma.done.wait [#allocation3], 256  }
 0x327   :  { %707 = vsyncadd [#allocation3], 4294967040 }
 0x328   :  { %708 = dma.done.wait [#allocation5], 384  }
 0x329   :  { %709 = vsyncadd [#allocation5], 4294966912 }
 0x32a   :  { %710 = dma.done.wait [#allocation8], 128  }
 0x32b   :  { %711 = vsyncadd [#allocation8], 4294967168 }
 0x32c   :  { %486 = vsyncpa [#allocation3], 1 }
 0x32d   :  { %487 = vsyncpa [#allocation5], 1 }
 0x32e   :  { %488 = vsyncpa [#allocation8], 1 }

// kernel: tpu_custom_call.1
= control target key start
LH: loop header
LB: loop body
LE: loop exit
PB: predicated region body
PF: predicated region fallthrough
CT: control target
= control target key end

     0   :  { %18 = vsyncpa [#allocation3], 0  ;;  %s939_s0 = inlined_call_operand.vmem [shape: f32[1,16,128], index: 0, kind: input, shape index: {}]   ;;  %s940_s1 = inlined_call_operand.vmem [shape: f32[16,16], index: 1, kind: input, shape index: {}]   ;;  %s941_s2 = inlined_call_operand.vmem [shape: f32[128,128], index: 2, kind: input, shape index: {}]   ;;  %s942_s3 = inlined_call_operand.vmem [shape: f32[8,8], index: 3, kind: input, shape index: {}]   ;;  %s943_s4 = inlined_call_operand.vmem [shape: f32[128,64], index: 4, kind: input, shape index: {}]   ;;  %s944_s5 = inlined_call_operand.vmem [shape: f32[16,1], index: 5, kind: input, shape index: {}]   ;;  %s945_s6 = inlined_call_operand.vmem [shape: f32[1,128], index: 6, kind: input, shape index: {}]   ;;  %s946_s7 = inlined_call_operand.vmem [shape: f32[8,1], index: 7, kind: input, shape index: {}]   ;;  %s947_s8 = inlined_call_operand.vmem [shape: f32[1,64], index: 8, kind: input, shape index: {}]   ;;  %s948_s9 = inlined_call_operand.hbm [shape: f32[1,16,128], index: 9, kind: output, shape index: {0}]   ;;  %s949_s10 = inlined_call_operand.hbm [shape: f32[1,8,64], index: 10, kind: output, shape index: {1}]   ;;  %s950_s11 = inlined_call_operand.hbm [shape: f32[1,16,128], index: 11, kind: output, shape index: {2}]   ;;  %s951_s12 = inlined_call_operand.hbm [shape: f32[1,8,64], index: 12, kind: output, shape index: {3}]  }
   0x1   :  { %19 = vsyncpa [#allocation5], 0  ;;  %v40_v0 = vld [vmem:[%s939_s0 + $0x8] sm:$0xff]  ;;  %v39_v1 = vld [vmem:[%s939_s0] sm:$0xff]  ;;  %vm43_vm0 = vcmask 130048  }
   0x2   :  { %v41_v2 = vld [vmem:[%s940_s1] sm:$0xff]  ;;  %533 = vmatprep.subr.mxu0 %v40_v0  ;;  %v140_v3 = vld [vmem:[%s941_s2 + $0x78] sm:$0xff]  ;;  %v139_v4 = vld [vmem:[%s941_s2 + $0x70] sm:$0xff] }
   0x3   :  { %537 = vmatprep.mubr.msk.f32.mxu0 %vm43_vm0, %v41_v2  ;;  %534 = vmatpush3.msra.mxu0 %v40_v0  ;;  %v42_v5 = vld [vmem:[%s940_s1 + $0x8] sm:$0xff]  ;;  %v137_v7 = vld [vmem:[%s941_s2 + $0x60] sm:$0xff] }
   0x4   :  { %540 = vmatprep.subr.mxu1 %v140_v3  ;;  %535 = vmatprep.subr.mxu0 %v39_v1  ;;  %v138_v6 = vld [vmem:[%s941_s2 + $0x68] sm:$0xff] }
   0x5   :  { %541 = vmatpush3.msra.mxu1 %v140_v3  ;;  %536 = vmatpush3.msra.mxu0 %v39_v1 }
   0x6   :  { %542 = vmatprep.subr.mxu1 %v139_v4  ;;  %538 = vmatmul.mubr.msk.f32.vlgmr.msra.gmra.mxu0 %vm43_vm0, %v42_v5 }
   0x7   :  { %543 = vmatpush3.msra.mxu1 %v139_v4 }
   0x8   :  { %544 = vmatprep.subr.mxu1 %v138_v6 }
   0x9   :  { %20 = vsyncpa [#allocation8], 0  ;;  %545 = vmatpush3.msra.mxu1 %v138_v6  ;;  %v136_v8 = vld [vmem:[%s941_s2 + $0x58] sm:$0xff]  ;;  %v135_v9 = vld [vmem:[%s941_s2 + $0x50] sm:$0xff]  ;;  %v712_v23 = vmov 0   ;;  %v713_v24 = vmov 0.0   ;;  %v398_v44 = vlaneseq }
   0xa   :  { %546 = vmatprep.subr.mxu1 %v137_v7  ;;  %v134_v10 = vld [vmem:[%s941_s2 + $0x48] sm:$0xff]  ;;  %v133_v11 = vld [vmem:[%s941_s2 + $0x40] sm:$0xff]  ;;  %v132_v12 = vld [vmem:[%s941_s2 + $0x38] sm:$0xff]  ;;  %624 = vset.pattern.permute.xlu0 %v712_v23  ;;  %vm714_vm3 = vmmov 0   ;;  %vm303_vm11 = vcmask 64512   ;;  %s715_s18 = smov [#allocation2]  }
   0xb   :  { %547 = vmatpush3.msra.mxu1 %v137_v7  ;;  %v131_v13 = vld [vmem:[%s941_s2 + $0x30] sm:$0xff]  ;;  %v130_v14 = vld [vmem:[%s941_s2 + $0x28] sm:$0xff]  ;;  %v129_v15 = vld [vmem:[%s941_s2 + $0x20] sm:$0xff]  ;;  %575 = vmatprep.subr.mxu0 %v713_v24  ;;  %v399_v46 = vshrl.u32 %v398_v44, 7  ;;  %s435_s1 = sshll.u32 %s715_s18, 4  ;;  %s436_s1 = int_to_ptr.vmem [resolvable:$true] %s435_s1 }
   0xc   :  { %548 = vmatprep.subr.mxu1 %v136_v8  ;;  %v128_v16 = vld [vmem:[%s941_s2 + $0x18] sm:$0xff]  ;;  %v127_v17 = vld [vmem:[%s941_s2 + $0x10] sm:$0xff]  ;;  %v126_v18 = vld [vmem:[%s941_s2 + $0x8] sm:$0xff]  ;;  %625 = vset.pattern.permute.xlu1 %v712_v23  ;;  %s626_s19 = scalar_lea.vmem %s436_s1, 256  ;;  %p631_p1 = scmp.lt.s32.totalorder %s436_s1, %s436_s1 }
   0xd   :  { %549 = vmatpush3.msra.mxu1 %v136_v8  ;;  %v125_v19 = vld [vmem:[%s941_s2] sm:$0xff]  ;;  %v382_v21 = vld [vmem:[%s944_s5 + $0x8] sm:$0xff]  ;;  %v232_v22 = vld [vmem:[%s943_s4 + $0x78] sm:$0xff]  ;;  %607 = vmatprep.mubr.msk.f32.mxu0 %vm714_vm3, %v713_v24  ;;  %v400_v48 = vsub.s32 0, %v399_v46  ;;  %p627_p0 = scmp.ne.s32.totalorder %s436_s1, %s626_s19  ;;  %p632_p2 = scmp.lt.s32.totalorder %s626_s19, %s626_s19 }
   0xe   :  { %550 = vmatprep.subr.mxu1 %v135_v9  ;;  %v381_v20 = vld [vmem:[%s944_s5] sm:$0xff]  ;;  %vm384_vm2 = vcmp.gt.f32.partialorder %v382_v21, 0.5  ;;  %v231_v25 = vld [vmem:[%s943_s4 + $0x70] sm:$0xff]  ;;  %576 = vmatpush3.msra.mxu0 %v232_v22  ;;  %v230_v27 = vld [vmem:[%s943_s4 + $0x68] sm:$0xff] }
   0xf   :  { %551 = vmatpush3.msra.mxu1 %v135_v9  ;;  %vm383_vm1 = vcmp.gt.f32.partialorder %v381_v20, 0.5  ;;  %577 = vmatprep.subr.mxu0 %v713_v24  ;;  %v388_v28 = vsel %vm384_vm2, 1, %v712_v23  ;;  %v229_v29 = vld [vmem:[%s943_s4 + $0x60] sm:$0xff]  ;;  %v228_v30 = vld [vmem:[%s943_s4 + $0x58] sm:$0xff]  ;;  %v227_v31 = vld [vmem:[%s943_s4 + $0x50] sm:$0xff]  ;;  %p633_p3 = por %p632_p2, %p631_p1 }
  0x10   :  { %552 = vmatprep.subr.mxu1 %v134_v10  ;;  %v387_v26 = vsel %vm383_vm1, 1, %v712_v23  ;;  %578 = vmatpush3.msra.mxu0 %v231_v25  ;;  %v226_v32 = vld [vmem:[%s943_s4 + $0x48] sm:$0xff]  ;;  %v225_v33 = vld [vmem:[%s943_s4 + $0x40] sm:$0xff]  ;;  %v224_v34 = vld [vmem:[%s943_s4 + $0x38] sm:$0xff] }
  0x11   :  { %553 = vmatpush3.msra.mxu1 %v134_v10  ;;  %390 = vperm.xlu0 %624, %v387_v26   ;;  %v223_v35 = vld [vmem:[%s943_s4 + $0x30] sm:$0xff]  ;;  %v222_v36 = vld [vmem:[%s943_s4 + $0x28] sm:$0xff]  ;;  %v221_v37 = vld [vmem:[%s943_s4 + $0x20] sm:$0xff]  ;;  %p634_p4 = pnand %p633_p3, %p627_p0 }
  0x12   :  { %554 = vmatprep.subr.mxu1 %v133_v11  ;;  %579 = vmatprep.subr.mxu0 %v713_v24  ;;  %v220_v38 = vld [vmem:[%s943_s4 + $0x18] sm:$0xff]  ;;  %v219_v39 = vld [vmem:[%s943_s4 + $0x10] sm:$0xff]  ;;  %v218_v42 = vld [vmem:[%s943_s4 + $0x8] sm:$0xff] }
  0x13   :  { %555 = vmatpush3.msra.mxu1 %v133_v11  ;;  %580 = vmatpush3.msra.mxu0 %v230_v27  ;;  %v217_v43 = vld [vmem:[%s943_s4] sm:$0xff] }
  0x14   :  { %556 = vmatprep.subr.mxu1 %v132_v12  ;;  %581 = vmatprep.subr.mxu0 %v713_v24  ;;  %v385_v45 = vld [vmem:[%s945_s6] sm:$0x1] }
  0x15   :  { %557 = vmatpush3.msra.mxu1 %v132_v12  ;;  %393 = vperm.xlu0 %624, %v388_v28   ;;  %vm386_vm4 = vcmp.gt.f32.partialorder %v385_v45, 0.5  ;;  %v405_v58 = vld [vmem:[%s946_s7] sm:$0xff] }
  0x16   :  { %558 = vmatprep.subr.mxu1 %v131_v13  ;;  %582 = vmatpush3.msra.mxu0 %v229_v29  ;;  %v397_v49 = vsel %vm386_vm4, 1, %v712_v23  ;;  %vm406_vm10 = vcmp.gt.f32.partialorder %v405_v58, 0.5  ;;  %v216_v60 = vld [vmem:[%s942_s3] sm:$0xff] }
  0x17   :  { %559 = vmatpush3.msra.mxu1 %v131_v13  ;;  %583 = vmatprep.subr.mxu0 %v713_v24  ;;  %v401_v50 = vrot.slane %v397_v49, %v400_v48  ;;  %v409_v59 = vsel %vm406_vm10, 1, %v712_v23 }
  0x18   :  { %560 = vmatprep.subr.mxu1 %v130_v14  ;;  %584 = vmatpush3.msra.mxu0 %v228_v30 }
  0x19   :  { %561 = vmatpush3.msra.mxu1 %v130_v14  ;;  %585 = vmatprep.subr.mxu0 %v713_v24  ;;  %vm402_vm5 = vcmp.eq.s32.totalorder %v401_v50, 1 }
  0x1a   :  { %562 = vmatprep.subr.mxu1 %v129_v15  ;;  %586 = vmatpush3.msra.mxu0 %v227_v31 }
  0x1b   :  { %563 = vmatpush3.msra.mxu1 %v129_v15  ;;  %587 = vmatprep.subr.mxu0 %v713_v24 }
  0x1c   :  { %564 = vmatprep.subr.mxu1 %v128_v16  ;;  %588 = vmatpush3.msra.mxu0 %v226_v32 }
  0x1d   :  { %565 = vmatpush3.msra.mxu1 %v128_v16  ;;  %589 = vmatprep.subr.mxu0 %v713_v24 }
  0x1e   :  { %566 = vmatprep.subr.mxu1 %v127_v17  ;;  %590 = vmatpush3.msra.mxu0 %v225_v33 }
  0x1f   :  { %567 = vmatpush3.msra.mxu1 %v127_v17  ;;  %591 = vmatprep.subr.mxu0 %v713_v24 }
  0x20   :  { %568 = vmatprep.subr.mxu1 %v126_v18  ;;  %592 = vmatpush3.msra.mxu0 %v224_v34 }
  0x21   :  { %569 = vmatpush3.msra.mxu1 %v126_v18  ;;  %593 = vmatprep.subr.mxu0 %v713_v24 }
  0x22   :  { %570 = vmatprep.subr.mxu1 %v125_v19  ;;  %594 = vmatpush3.msra.mxu0 %v223_v35 }
  0x23   :  { %571 = vmatpush3.msra.mxu1 %v125_v19  ;;  %595 = vmatprep.subr.mxu0 %v713_v24 }
  0x24   :  { %610 = vmatprep.subr.mxu1 %v713_v24  ;;  %596 = vmatpush3.msra.mxu0 %v222_v36 }
  0x25   :  { %597 = vmatprep.subr.mxu0 %v713_v24  ;;  %411 = vperm.xlu1 %625, %v409_v59  }
  0x26   :  { %598 = vmatpush3.msra.mxu0 %v221_v37 }
  0x27   :  { %599 = vmatprep.subr.mxu0 %v713_v24 }
  0x28   :  { %600 = vmatpush3.msra.mxu0 %v220_v38 }
  0x29   :  { %601 = vmatprep.subr.mxu0 %v713_v24 }
  0x2a   :  { %602 = vmatpush3.msra.mxu0 %v219_v39 }
  0x2b   :  { %603 = vmatprep.subr.mxu0 %v713_v24 }
  0x2c   :  { %604 = vmatpush3.msra.mxu0 %v218_v42 }
  0x2d   :  { %605 = vmatprep.subr.mxu0 %v713_v24 }
  0x2e   :  { %606 = vmatpush3.msra.mxu0 %v217_v43 }
  0x8c   :  { %v391_v47 = vpop.permute.xlu0 %390 }
  0x8d   :  { %vm395_vm7 = vcmp.eq.s32.totalorder %v391_v47, 1 }
  0x8e   :  { %vm403_vm9 = vmor %vm395_vm7, %vm402_vm5 }
  0x90   :  { %v394_v51 = vpop.permute.xlu0 %393 }
  0x91   :  { %vm396_vm6 = vcmp.eq.s32.totalorder %v394_v51, 1 }
  0x92   :  { %vm404_vm8 = vmor %vm396_vm6, %vm402_vm5 }
  0xc6   :  { %v539_v40 = vpop.f32.mrf.mxu0 }
  0xc8   :  { %v116_v41 = vpop.f32.mrf.mxu0 }
  0xc9   :  { %572 = vmatprep.mubr.f32.mxu1 %v116_v41 }
  0xca   :  { %573 = vmatmul.mubr.f32.vlgmr.msra.gmra.mxu1 %v539_v40 }
  0xcb   :  { %612 = vmatprep.mubr.msk.f32.mxu1 %vm714_vm3, %v713_v24 }
 0x18a   :  { %v574_v52 = vpop.f32.mrf.mxu1 }
 0x18b   :  { %378 = vst [vmem:[#allocation2 + $0x8] sm:$0xff] %v574_v52  ;;  %v422_v53 = vand.u32 2147483647, %v574_v52 }
 0x18c   :  { %v207_v54 = vpop.f32.mrf.mxu1 }
 0x18d   :  { %v424_v55 = vsel %vm404_vm8, %v422_v53, inf  ;;  %377 = vst [vmem:[#allocation2] sm:$0xff] %v207_v54  ;;  %v421_v56 = vand.u32 2147483647, %v207_v54  ;;  %608 = vmatmul.mubr.f32.vlgmr.msra.gmra.mxu0 %v207_v54 }
 0x18e   :  { %426 = vst [vmem:[#allocation6 + $0x8] sm:$0xff] %v424_v55 }
 0x18f   :  { %v423_v57 = vsel %vm403_vm9, %v421_v56, inf }
 0x190   :  { %425 = vst [vmem:[#allocation6] sm:$0xff] %v423_v57 }
 0x24d   :  { %v299_v61 = vpop.f32.mrf.mxu0 }
 0x24e   :  { %611 = vmatpush3.msra.mxu1 %v299_v61 }
 0x24f   :  { %v609_v62 = vpop.f32.mrf.mxu0  ;;  %613 = vmatmul.mubr.msk.f32.vlgmr.msra.gmra.mxu1 %vm303_vm11, %v216_v60 }
 0x250   :  { %637 = shalt.err (!%p634_p4)
}
 0x251   :  { %s716_s7 = smov 128   ;;  %s717_s20 = smov 8   ;;  %v407_v63 = vld [vmem:[%s947_s8] sm:$0x1]  ;;  %v412_v2 = vpop.permute.xlu1 %411  ;;  %vm379_vm15 = vcmask 523264  }
 0x252   :  { %441 = dma.vmem_to_hbm [thread:$0]  %s436_s1, 256, %s948_s9, [#allocation3], %s716_s7, %s716_s7, %s717_s20   ;;  %vm408_vm12 = vcmp.gt.f32.partialorder %v407_v63, 0.5  ;;  %vm413_vm14 = vcmp.eq.s32.totalorder %v412_v2, 1 }
 0x253   :  { %v414_v0 = vsel %vm408_vm12, 1, %v712_v23  ;;  %s718_s24 = smov [#allocation4]   ;;  %s719_s26 = smov [#allocation6]  }
 0x254   :  { %v418_v1 = vrot.slane %v414_v0, %v400_v48  ;;  %s448_s25 = sshll.u32 %s718_s24, 4  ;;  %s457_s2 = sshll.u32 %s719_s26, 4  ;;  %s449_s25 = int_to_ptr.vmem [resolvable:$true] %s448_s25  ;;  %s458_s2 = int_to_ptr.vmem [resolvable:$true] %s457_s2 }
 0x255   :  { %s720_s27 = smov [#allocation7]   ;;  %s646_s8 = scalar_lea.vmem %s449_s25, 128 }
 0x256   :  { %vm419_vm13 = vcmp.eq.s32.totalorder %v418_v1, 1  ;;  %s470_s5 = sshll.u32 %s720_s27, 4  ;;  %p647_p5 = scmp.ne.s32.totalorder %s449_s25, %s646_s8  ;;  %s471_s5 = int_to_ptr.vmem [resolvable:$true] %s470_s5 }
 0x257   :  { %vm420_vm0 = vmor %vm413_vm14, %vm419_vm13  ;;  %p651_p6 = scmp.lt.s32.totalorder %s449_s25, %s449_s25  ;;  %p652_p7 = scmp.lt.s32.totalorder %s646_s8, %s646_s8 }
 0x259   :  { %p653_p8 = por %p652_p7, %p651_p6 }
 0x25b   :  { %p654_p9 = pnand %p653_p8, %p647_p5 }
 0x30f   :  { %v373_v3 = vpop.f32.mrf.mxu1 }
 0x310   :  { %v427_v4 = vand.u32 2147483647, %v373_v3  ;;  %380 = vst.msk [vmem:[#allocation4] sm:$0xff] %vm379_vm15, %v373_v3 }
 0x311   :  { %v614_v5 = vpop.f32.mrf.mxu1 }
 0x312   :  { %657 = shalt.err (!%p654_p9)
}
 0x313   :  { %451 = dma.vmem_to_hbm [thread:$0]  %s449_s25, 128, %s949_s10, [#allocation5]   ;;  %v428_v6 = vsel %vm420_vm0, %v427_v4, inf }
 0x314   :  { %s666_s29 = scalar_lea.vmem %s458_s2, 256  ;;  %p671_p11 = scmp.lt.s32.totalorder %s458_s2, %s458_s2 }
 0x315   :  { %p667_p10 = scmp.ne.s32.totalorder %s458_s2, %s666_s29  ;;  %p672_p12 = scmp.lt.s32.totalorder %s666_s29, %s666_s29 }
 0x317   :  { %p673_p13 = por %p672_p12, %p671_p11 }
 0x319   :  { %p674_p0 = pnand %p673_p13, %p667_p10 }
 0x31b   :  { %677 = shalt.err (!%p674_p0)
}
 0x31c   :  { %463 = dma.vmem_to_hbm [thread:$0]  %s458_s2, 256, %s950_s11, [#allocation5], %s716_s7, %s716_s7, %s717_s20   ;;  %429 = vst.msk [vmem:[#allocation7] sm:$0xff] %vm379_vm15, %v428_v6 }
 0x31d   :  { %s686_s14 = scalar_lea.vmem %s471_s5, 128  ;;  %p691_p2 = scmp.lt.s32.totalorder %s471_s5, %s471_s5 }
 0x31e   :  { %p687_p1 = scmp.ne.s32.totalorder %s471_s5, %s686_s14  ;;  %p692_p3 = scmp.lt.s32.totalorder %s686_s14, %s686_s14 }
 0x320   :  { %p693_p4 = por %p692_p3, %p691_p2 }
 0x322   :  { %p694_p5 = pnand %p693_p4, %p687_p1 }
 0x324   :  { %697 = shalt.err (!%p694_p5)
}
 0x325   :  { %473 = dma.vmem_to_hbm [thread:$0]  %s471_s5, 128, %s951_s12, [#allocation8]  }
 0x326   :  { %706 = dma.done.wait [#allocation3], 256  }
 0x327   :  { %707 = vsyncadd [#allocation3], 4294967040 }
 0x328   :  { %708 = dma.done.wait [#allocation5], 384  }
 0x329   :  { %709 = vsyncadd [#allocation5], 4294966912 }
 0x32a   :  { %710 = dma.done.wait [#allocation8], 128  }
 0x32b   :  { %711 = vsyncadd [#allocation8], 4294967168 }
 0x32c   :  { %486 = vsyncpa [#allocation3], 1 }
 0x32d   :  { %487 = vsyncpa [#allocation5], 1 }
 0x32e   :  { %488 = vsyncpa [#allocation8], 1 }

</bundles_post_ra>
